<compile_context>
chip_gen: v7x
topology: tpu7x:2x2x1
jax: 0.10.0
libtpu: 0.0.40
codegen_flags: <defaults>
</compile_context>

<pallas_src>
import functools

import jax
import jax.numpy as jnp
from jax import lax
from jax.experimental import pallas as pl
from jax.experimental.pallas import tpu as pltpu

_VMEM_LIMIT = 48 * 1024 * 1024


def _round_up(x, m):
    return ((x + m - 1) // m) * m


# ---------------------------------------------------------------------------
# Generic row-tiled Linear: out = x @ W (+ bias).  Used for to_qkv and to_out.
# ---------------------------------------------------------------------------
def _linear_kernel(x_ref, w_ref, o_ref):
    # W has a constant block index (resident in VMEM) and is used in its
    # native dtype -- no per-step recast through the VPU.
    o_ref[...] = jnp.dot(
        x_ref[...], w_ref[...], preferred_element_type=jnp.float32
    ).astype(o_ref.dtype)


def _linear_bias_kernel(x_ref, w_ref, b_ref, o_ref):
    acc = jnp.dot(x_ref[...], w_ref[...], preferred_element_type=jnp.float32)
    acc = acc + b_ref[...].astype(jnp.float32)
    o_ref[...] = acc.astype(o_ref.dtype)


def linear_pallas(x2, w, bias=None, *, tile_rows=256):
    """x2: (rows, d_in), w: (d_in, d_out), bias: (d_out,) or None -> (rows, d_out)."""
    rows, d_in = x2.shape
    d_out = w.shape[1]

    # MXU-friendly tile: multiple of 16, clamped to the (padded) row count.
    tr = min(max(tile_rows, 16), _round_up(rows, 16))
    tr = _round_up(tr, 16)
    rows_p = _round_up(rows, tr)
    if rows_p != rows:
        x2 = jnp.pad(x2, ((0, rows_p - rows), (0, 0)))

    in_specs = [
        pl.BlockSpec((tr, d_in), lambda i: (i, 0)),      # x row tile
        pl.BlockSpec((d_in, d_out), lambda i: (0, 0)),   # W (resident)
    ]
    args = [x2, w]
    if bias is None:
        kernel = _linear_kernel
    else:
        kernel = _linear_bias_kernel
        in_specs.append(pl.BlockSpec((1, d_out), lambda i: (0, 0)))
        args.append(bias.reshape(1, d_out))

    out = pl.pallas_call(
        kernel,
        out_shape=jax.ShapeDtypeStruct((rows_p, d_out), x2.dtype),
        grid_spec=pltpu.PrefetchScalarGridSpec(
            num_scalar_prefetch=0,
            grid=(rows_p // tr,),
            in_specs=in_specs,
            out_specs=pl.BlockSpec((tr, d_out), lambda i: (i, 0)),
        ),
        compiler_params=pltpu.CompilerParams(
            dimension_semantics=("parallel",),
            vmem_limit_bytes=_VMEM_LIMIT),
    )(*args)
    return out[:rows] if rows_p != rows else out


# ---------------------------------------------------------------------------
# Attention core: per (batch*head) -> softmax(q k^T * scale), sum over queries,
# then weighted sum of V.
# ---------------------------------------------------------------------------
def _attn_core_kernel(q_ref, k_ref, v_ref, o_ref, *, scale):
    q = q_ref[0].astype(jnp.float32) * scale            # (N, d) -- fold scale here
    k = k_ref[0].astype(jnp.float32)                    # (N, d)
    v = v_ref[0].astype(jnp.float32)                    # (N, d)

    # q @ k^T on the MXU (contract the feature dim; no transpose copy).
    dots = lax.dot_general(q, k, (((1,), (1,)), ((), ())),
                           preferred_element_type=jnp.float32)   # (N, N)

    # Numerically-stable softmax over keys.
    m = jnp.max(dots, axis=-1, keepdims=True)
    e = jnp.exp(dots - m)
    attn = e / jnp.sum(e, axis=-1, keepdims=True)

    # Module's attn.sum(dim=2): sum over the QUERY index -> per-key weight.
    wkey = jnp.sum(attn, axis=0, keepdims=True)          # (1, N)

    out = jnp.dot(wkey, v, preferred_element_type=jnp.float32)   # (1, d)
    o_ref[...] = out.astype(o_ref.dtype)[None]           # (1, 1, d) block


def attn_core_pallas(q, k, v, *, scale):
    """q, k, v: (B*H, N, d) -> (B*H, 1, d)."""
    BH, N, d = q.shape
    kernel = functools.partial(_attn_core_kernel, scale=scale)
    qkv_spec = pl.BlockSpec((1, N, d), lambda i: (i, 0, 0))
    return pl.pallas_call(
        kernel,
        out_shape=jax.ShapeDtypeStruct((BH, 1, d), q.dtype),
        grid_spec=pltpu.PrefetchScalarGridSpec(
            num_scalar_prefetch=0,
            grid=(BH,),
            in_specs=[qkv_spec, qkv_spec, qkv_spec],
            out_specs=pl.BlockSpec((1, 1, d), lambda i: (i, 0, 0)),
        ),
        compiler_params=pltpu.CompilerParams(
            dimension_semantics=("parallel",),
            vmem_limit_bytes=_VMEM_LIMIT),
    )(q, k, v)


# ---------------------------------------------------------------------------
# Full forward pass of the Attention module.
# ---------------------------------------------------------------------------
def attention_forward(x, w_qkv, w_out, b_out, *, heads, dim_head, tile_rows=256):
    B, N, D = x.shape
    inner = heads * dim_head
    scale = dim_head ** (-0.5)

    # 1) to_qkv (bias-free), row-tiled over B*N rows.
    qkv = linear_pallas(x.reshape(B * N, D), w_qkv, tile_rows=tile_rows)
    qkv = qkv.reshape(B, N, 3, heads, dim_head)
    qkv = jnp.transpose(qkv, (2, 0, 3, 1, 4))            # (3, B, H, N, d)
    q = qkv[0].reshape(B * heads, N, dim_head)
    k = qkv[1].reshape(B * heads, N, dim_head)
    v = qkv[2].reshape(B * heads, N, dim_head)

    # 2) softmax-attention summed over queries, applied to V.
    o = attn_core_pallas(q, k, v, scale=scale)           # (B*H, 1, d)
    o = o.reshape(B, inner)                              # 'b h n d -> b n (h d)', n=1

    # 3) to_out projection (project_out path).
    if w_out is None:
        return o.reshape(B, 1, inner)
    y = linear_pallas(o, w_out, b_out, tile_rows=tile_rows)   # (B, D)
    return y.reshape(B, 1, D)


# ---------------------------------------------------------------------------
# Pure-JAX reference (mirrors the PyTorch forward, a=None, dropout=0).
# ---------------------------------------------------------------------------
def attention_ref(x, w_qkv, w_out, b_out, *, heads, dim_head):
    B, N, D = x.shape
    inner = heads * dim_head
    scale = dim_head ** (-0.5)
    hp = jax.lax.Precision.HIGHEST

    qkv = jnp.einsum('bnd,de->bne', x, w_qkv, precision=hp)
    q, k, v = jnp.split(qkv, 3, axis=-1)

    def to_heads(t):
        return t.reshape(B, N, heads, dim_head).transpose(0, 2, 1, 3)

    q, k, v = to_heads(q), to_heads(k), to_heads(v)
    dots = jnp.einsum('bhid,bhjd->bhij', q, k, precision=hp) * scale
    attn = jax.nn.softmax(dots, axis=-1)
    attn = attn.sum(axis=2)                               # (B, H, N)
    out = jnp.einsum('bhj,bhjd->bhd', attn, v, precision=hp)
    out = out.reshape(B, 1, inner)
    if w_out is None:
        return out
    return jnp.einsum('bne,ed->bnd', out, w_out, precision=hp) + b_out


if __name__ == "__main__":
    B, N, DIM = 2, 8, 32
    HEADS, DIM_HEAD = 8, 16          # inner_dim = 128 -> qkv width 384 (lane-dense)
    INNER = HEADS * DIM_HEAD

    key = jax.random.PRNGKey(0)
    kx, kqkv, kw, kb = jax.random.split(key, 4)

    x = jax.random.normal(kx, (B, N, DIM), dtype=jnp.float32)
    w_qkv = jax.random.normal(kqkv, (DIM, 3 * INNER), dtype=jnp.float32) * 0.05
    w_out = jax.random.normal(kw, (INNER, DIM), dtype=jnp.float32) * 0.05
    b_out = jax.random.normal(kb, (DIM,), dtype=jnp.float32) * 0.01

    out = attention_forward(x, w_qkv, w_out, b_out, heads=HEADS, dim_head=DIM_HEAD)
    out = jax.block_until_ready(out)

    ref = attention_ref(x, w_qkv, w_out, b_out, heads=HEADS, dim_head=DIM_HEAD)
    assert out.shape == (B, 1, DIM), out.shape
    max_err = float(jnp.max(jnp.abs(out - ref)))
    assert jnp.allclose(out, ref, atol=1e-3, rtol=1e-3), f"mismatch, max_err={max_err}"

    print("KERNEL_OK")
</pallas_src>

<mosaic_0001>
module attributes {stable_mosaic.version = 11 : i64} {
  func.func @_linear_kernel(%arg0: i32, %arg1: memref<16x32xf32, #tpu.memory_space<vmem>>, %arg2: memref<32x384xf32, #tpu.memory_space<vmem>>, %arg3: memref<16x384xf32, #tpu.memory_space<vmem>>) attributes {dimension_semantics = [#tpu.dimension_semantics<parallel>], iteration_bounds = array<i64: 1>, scalar_prefetch = 0 : i64, scratch_operands = 0 : i64, tpu.core_type = #tpu.core_type<tc>, window_params = [{transform_indices = @transform_0, window_bounds = array<i64: 16, 32>}, {pipeline_mode = #tpu.pipeline_mode<synchronous>, transform_indices = @transform_1, window_bounds = array<i64: 32, 384>}, {transform_indices = @transform_2, window_bounds = array<i64: 16, 384>}]} {
    %c0 = arith.constant 0 : index
    %c0_0 = arith.constant 0 : index
    %0 = vector.load %arg1[%c0, %c0_0] : memref<16x32xf32, #tpu.memory_space<vmem>>, vector<16x32xf32>
    %c0_1 = arith.constant 0 : index
    %c0_2 = arith.constant 0 : index
    %1 = vector.load %arg2[%c0_1, %c0_2] : memref<32x384xf32, #tpu.memory_space<vmem>>, vector<32x384xf32>
    %cst = arith.constant dense<0.000000e+00> : vector<16x384xf32>
    %2 = tpu.matmul %0, %1, %cst {dimension_numbers = #tpu.dot_dimension_numbers<[1], [0], [0], [1], [0, 0, 1, 1], [], []>} : vector<16x32xf32>, vector<32x384xf32>, vector<16x384xf32> -> vector<16x384xf32>
    %c0_3 = arith.constant 0 : index
    %c0_4 = arith.constant 0 : index
    %3 = vector.load %arg3[%c0_3, %c0_4] : memref<16x384xf32, #tpu.memory_space<vmem>>, vector<16x384xf32>
    tpu.vector_store %arg3[%c0_3, %c0_4], %2 {strides = array<i32>} : memref<16x384xf32, #tpu.memory_space<vmem>>, vector<16x384xf32>,
    return
  }
  func.func @transform_0(%arg0: i32) -> (i32, i32) {
    %c0_i32 = arith.constant 0 : i32
    %c0_i32_0 = arith.constant 0 : i32
    return %arg0, %c0_i32 : i32, i32
  }
  func.func @transform_1(%arg0: i32) -> (i32, i32) {
    %c0_i32 = arith.constant 0 : i32
    %c0_i32_0 = arith.constant 0 : i32
    %c0_i32_1 = arith.constant 0 : i32
    return %c0_i32, %c0_i32_0 : i32, i32
  }
  func.func @transform_2(%arg0: i32) -> (i32, i32) {
    %c0_i32 = arith.constant 0 : i32
    %c0_i32_0 = arith.constant 0 : i32
    return %arg0, %c0_i32 : i32, i32
  }
}

</mosaic_0001>

<bundles_post_ra>
// kernel: tpu_custom_call.1
= control target key start
LH: loop header
LB: loop body
LE: loop exit
PB: predicated region body
PF: predicated region fallthrough
CT: control target
= control target key end

     0   :  { %7 = vsyncpa [#allocation3], 0  ;;  %s419_s0 = inlined_call_operand.hbm [shape: f32[16,32], index: 0, kind: input, shape index: {}]   ;;  %s420_s1 = inlined_call_operand.hbm [shape: f32[32,384], index: 1, kind: input, shape index: {}]   ;;  %s421_s2 = inlined_call_operand.hbm [shape: f32[16,384], index: 2, kind: output, shape index: {}]  }
   0x1   :  { %8 = vsyncpa [#allocation6], 0 }
   0x2   :  { %9 = vsyncpa [#allocation4], 0  ;;  %s354_s9 = smov [#allocation2]   ;;  %s282_s13 = scalar_lea.hbm %s419_s0, 256 }
   0x3   :  { %s15_s10 = sshll.u32 %s354_s9, 4  ;;  %p283_p0 = scmp.ne.s32.totalorder %s419_s0, %s282_s13  ;;  %s16_s10 = int_to_ptr.vmem [resolvable:$true] %s15_s10 }
   0x4   :  { %p286_p1 = scmp.lt.u32.totalorder %s282_s13, %s419_s0 }
   0x6   :  { %p288_p2 = pnand %p286_p1, %p283_p0 }
   0x8   :  { %291 = shalt.err (!%p288_p2)
}
   0x9   :  { %s292_s18 = scalar_lea.vmem %s16_s10, 256  ;;  %p297_p4 = scmp.lt.s32.totalorder %s16_s10, %s16_s10 }
   0xa   :  { %p293_p3 = scmp.ne.s32.totalorder %s16_s10, %s292_s18  ;;  %p298_p5 = scmp.lt.s32.totalorder %s292_s18, %s292_s18 }
   0xc   :  { %p299_p6 = por %p298_p5, %p297_p4 }
   0xe   :  { %p300_p7 = pnand %p299_p6, %p293_p3 }
  0x10   :  { %303 = shalt.err (!%p300_p7)
}
  0x11   :  { %s355_s19 = smov 128   ;;  %s356_s20 = smov 8  }
  0x12   :  { %21 = dma.hbm_to_vmem [thread:$0]  %s419_s0, 256, %s16_s10, [#allocation3], %s355_s19, %s355_s19, %s356_s20  }
  0x13   :  { %s357_s23 = smov [#allocation5]   ;;  %s304_s27 = scalar_lea.hbm %s420_s1, 1536 }
  0x14   :  { %s27_s24 = sshll.u32 %s357_s23, 4  ;;  %p305_p8 = scmp.ne.s32.totalorder %s420_s1, %s304_s27  ;;  %s28_s24 = int_to_ptr.vmem [resolvable:$true] %s27_s24 }
  0x15   :  { %p308_p9 = scmp.lt.u32.totalorder %s304_s27, %s420_s1 }
  0x17   :  { %p310_p10 = pnand %p308_p9, %p305_p8 }
  0x19   :  { %313 = shalt.err (!%p310_p10)
}
  0x1a   :  { %s314_s4 = scalar_lea.vmem %s28_s24, 1536  ;;  %p319_p12 = scmp.lt.s32.totalorder %s28_s24, %s28_s24 }
  0x1b   :  { %p315_p11 = scmp.ne.s32.totalorder %s28_s24, %s314_s4  ;;  %p320_p13 = scmp.lt.s32.totalorder %s314_s4, %s314_s4 }
  0x1d   :  { %p321_p0 = por %p320_p13, %p319_p12 }
  0x1f   :  { %p322_p1 = pnand %p321_p0, %p315_p11 }
  0x21   :  { %325 = shalt.err (!%p322_p1)
}
  0x22   :  { %s358_s0 = smov 384   ;;  %s359_s5 = smov 24  }
  0x23   :  { %33 = dma.hbm_to_vmem [thread:$0]  %s420_s1, 1536, %s28_s24, [#allocation6], %s358_s0, %s358_s0, %s359_s5  }
  0x24   :  { %348 = dma.done.wait [#allocation3], 256  }
  0x25   :  { %349 = vsyncadd [#allocation3], 4294967040 }
  0x26   :  { %350 = dma.done.wait [#allocation6], 1536  }
  0x27   :  { %351 = vsyncadd [#allocation6], 4294965760  ;;  %v360_v0 = vmov 0.0   ;;  %v43_v1 = vld [vmem:[#allocation5 + $0x8] sm:$0xff]  ;;  %v46_v2 = vld [vmem:[#allocation5 + $0x20] sm:$0xff]  ;;  %vm54_vm0 = vcmask 261120  }
  0x28   :  { %125 = vmatprep.mubr.f32.mxu0 %v360_v0  ;;  %v42_v3 = vld [vmem:[#allocation5] sm:$0xff]  ;;  %v258_v4 = vpack.c.bf16 %v46_v2, %v43_v1  ;;  %v45_v5 = vld [vmem:[#allocation5 + $0x18] sm:$0xff]  ;;  %v44_v6 = vld [vmem:[#allocation5 + $0x10] sm:$0xff]  ;;  %s361_s1 = smov [#allocation7]  }
  0x29   :  { %v47_v7 = vld [vmem:[#allocation5 + $0x28] sm:$0xff]  ;;  %v260_v8 = vpack.c.bf16 %v45_v5, %v42_v3  ;;  %v49_v10 = vld [vmem:[#allocation5 + $0x38] sm:$0xff]  ;;  %v52_v11 = vld [vmem:[#allocation5 + $0x50] sm:$0xff]  ;;  %s224_s8 = sshll.u32 %s361_s1, 4  ;;  %s225_s8 = int_to_ptr.vmem [resolvable:$true] %s224_s8 }
  0x2a   :  { %v266_v9 = vpack.c.bf16 %v47_v7, %v44_v6  ;;  %v48_v12 = vld [vmem:[#allocation5 + $0x30] sm:$0xff]  ;;  %259 = vmatprep.subr.bf16.mxu0 %v258_v4  ;;  %v262_v13 = vpack.c.bf16 %v52_v11, %v49_v10  ;;  %v51_v14 = vld [vmem:[#allocation5 + $0x48] sm:$0xff]  ;;  %v50_v15 = vld [vmem:[#allocation5 + $0x40] sm:$0xff]  ;;  %s326_s9 = scalar_lea.vmem %s225_s8, 768  ;;  %p331_p3 = scmp.lt.s32.totalorder %s225_s8, %s225_s8 }
  0x2b   :  { %v53_v16 = vld [vmem:[#allocation5 + $0x58] sm:$0xff]  ;;  %261 = vmatpush1.bf16.msra.mxu0 %v260_v8  ;;  %v264_v17 = vpack.c.bf16 %v51_v14, %v48_v12  ;;  %v40_v19 = vld [vmem:[#allocation2] sm:$0xff]  ;;  %p327_p2 = scmp.ne.s32.totalorder %s225_s8, %s326_s9  ;;  %p332_p4 = scmp.lt.s32.totalorder %s326_s9, %s326_s9 }
  0x2c   :  { %267 = vmatprep.subr.bf16.mxu1 %v266_v9  ;;  %v270_v18 = vpack.c.bf16 %v53_v16, %v50_v15  ;;  %263 = vmatprep.subr.bf16.mxu0 %v262_v13  ;;  %v41_v20 = vld [vmem:[#allocation2 + $0x8] sm:$0xff] }
  0x2d   :  { %269 = vmatpush3.bf16.msra.mxu1 %v266_v9  ;;  %255 = vmatprep.mubr.msk.f32.mxu1 %vm54_vm0, %v40_v19  ;;  %p333_p5 = por %p332_p4, %p331_p3 }
  0x2e   :  { %271 = vmatprep.subr.bf16.mxu1 %v270_v18 }
  0x2f   :  { %265 = vmatpush1.bf16.msra.mxu0 %v264_v17  ;;  %p334_p6 = pnand %p333_p5, %p327_p2 }
  0x31   :  { %273 = vmatpush3.bf16.msra.mxu1 %v270_v18 }
  0x32   :  { %237 = vmatmul.mubr.msk.f32.vlgmr.msra.gmra.mrb[0].mxu0 %vm54_vm0, %v40_v19 }
  0x33   :  { %131 = vmatprep.mubr.f32.mxu0 %v360_v0 }
  0x34   :  { %256 = vmatmul.mubr.msk.f32.vlgmr.msra.gmra.mrb[0].mxu1 %vm54_vm0, %v41_v20 }
  0x36   :  { %238 = vmatmul.mubr.msk.f32.gmra.mrb[2].mxu0 %vm54_vm0, %v41_v20 }
 0x105   :  { %v127_v21 = vpop.f32.mrb[0].mxu0 }
 0x106   :  { %213 = vst [vmem:[#allocation7] sm:$0xff] %v127_v21  ;;  %v129_v22 = vpop.f32.mrb[1].mxu0 }
 0x107   :  { %v257_v23 = vpop.f32.mrb[0].mxu1  ;;  %214 = vst [vmem:[#allocation7 + $0x8] sm:$0xff] %v129_v22 }
 0x108   :  { %218 = vst [vmem:[#allocation7 + $0x28] sm:$0xff] %v257_v23  ;;  %v204_v24 = vpop.f32.mrb[1].mxu1 }
 0x109   :  { %215 = vst [vmem:[#allocation7 + $0x10] sm:$0xff] %v204_v24  ;;  %v133_v25 = vpop.f32.mrb[2].mxu0 }
 0x10a   :  { %216 = vst [vmem:[#allocation7 + $0x18] sm:$0xff] %v133_v25  ;;  %v135_v26 = vpop.f32.mrb[3].mxu0 }
 0x10b   :  { %217 = vst [vmem:[#allocation7 + $0x20] sm:$0xff] %v135_v26 }
 0x10c   :  { %337 = shalt.err (!%p334_p6)
}
 0x10d   :  { %s338_s12 = scalar_lea.hbm %s421_s2, 768 }
 0x10e   :  { %p339_p7 = scmp.ne.s32.totalorder %s421_s2, %s338_s12  ;;  %p342_p8 = scmp.lt.u32.totalorder %s338_s12, %s421_s2 }
 0x110   :  { %p344_p9 = pnand %p342_p8, %p339_p7 }
 0x112   :  { %347 = shalt.err (!%p344_p9)
}
 0x113   :  { %230 = dma.vmem_to_hbm [thread:$0]  %s225_s8, 768, %s421_s2, [#allocation4], %s358_s0, %s358_s0, %s359_s5  }
 0x114   :  { %352 = dma.done.wait [#allocation4], 768  }
 0x115   :  { %353 = vsyncadd [#allocation4], 4294966528 }
 0x116   :  { %234 = vsyncpa [#allocation3], 1 }
 0x117   :  { %235 = vsyncpa [#allocation6], 1 }
 0x118   :  { %236 = vsyncpa [#allocation4], 1 }

</bundles_post_ra>
